<compile_context>
chip_gen: v6e
topology: v6e:2x2x1
jax: 0.10.0
libtpu: 0.0.40
codegen_flags: <defaults>
</compile_context>

<pallas_src>
import math

import jax
import jax.numpy as jnp
from jax.experimental import pallas as pl
from jax.experimental.pallas import tpu as pltpu


NEG_SLOPE = 0.01  # PyTorch nn.LeakyReLU default negative_slope


def _round_up(x, m):
    return (x + m - 1) // m * m


def _cdiv(a, b):
    return (a + b - 1) // b


def _vmem_capacity_bytes():
    try:
        return int(pltpu.get_tpu_info().vmem_capacity_bytes)
    except Exception:
        return 64 * 1024 * 1024  # conservative fallback (v7x per-TC VMEM)


def linear2_kernel(x_ref, w1_ref, b1_ref, w2_ref, b2_ref, o_ref):
    """Fused Linear -> LeakyReLU -> Linear for one batch tile of rows.

    Weights (bf16, lane-padded) and biases (f32) are fully VMEM-resident and
    single-buffered; both matmuls run on the MXU with f32 accumulation.  The
    store slices the padded result down to the logical out_size lanes, so no
    post-call slice / extra HBM pass over y is needed.
    """
    cdt = w1_ref.dtype                                   # matmul operand dtype (bf16)
    x = x_ref[...].astype(cdt)                           # (tn, in_p)
    h = jnp.dot(x, w1_ref[...], preferred_element_type=jnp.float32) + b1_ref[...]
    h = jnp.maximum(h, NEG_SLOPE * h)                    # LeakyReLU: one mul + one max
    y = jnp.dot(h.astype(cdt), w2_ref[...], preferred_element_type=jnp.float32) + b2_ref[...]
    o_ref[...] = y[:, : o_ref.shape[-1]].astype(o_ref.dtype)


def linear2_forward(x, params, *, block_rows=None, out_dtype=None):
    """x: (N, in_size), f32 or bf16.  params: dict from init_linear2_params."""
    w1, b1, w2, b2 = params["w1"], params["b1"], params["w2"], params["b2"]
    N, in_size = x.shape
    in_p, hid_p = w1.shape
    out_p = w2.shape[1]
    out_size = params["out_size"]
    assert in_size == params["in_size"], "input feature size mismatch"

    out_dtype = x.dtype if out_dtype is None else jnp.dtype(out_dtype)
    out_itemsize = jnp.dtype(out_dtype).itemsize
    x_itemsize = jnp.dtype(x.dtype).itemsize

    weights_bytes = (w1.size * w1.dtype.itemsize + w2.size * w2.dtype.itemsize
                     + (b1.size + b2.size) * 4)

    vmem_cap = _vmem_capacity_bytes()

    # --- batch tile size --------------------------------------------------
    # Per-row VMEM cost of the pipelined x/out tiles (double-buffered) plus
    # the in-kernel temporaries (bf16 x copy, f32 h, bf16 h copy, f32 y).
    per_row = (2 * x_itemsize * in_p          # x tile, double buffered
               + 2 * out_itemsize * out_size  # out tile, double buffered
               + 2 * in_p                     # bf16 x copy
               + 6 * hid_p                    # f32 h + bf16 h copy
               + 4 * out_p)                   # f32 y before cast/slice
    if block_rows is None:
        budget = min(int(0.7 * vmem_cap) - weights_bytes, 48 * 1024 * 1024)
        budget = max(budget, 1024 * 1024)
        block_rows = max(256, min(budget // per_row, 4096))
        block_rows = (block_rows // 256) * 256          # MXU/lane friendly
    else:
        # sanitize caller value: >= 8 rows, multiple of 16 (bf16 sublane pack)
        block_rows = _round_up(max(int(block_rows), 8), 16)
    if N > 8:
        # Never bigger than ceil(N/2): keeps >= 2 grid steps so the "parallel"
        # batch axis can be split over both v7x TensorCores (free on v5e/v6e).
        block_rows = min(block_rows, _round_up(_cdiv(N, 2), 8))
    else:
        block_rows = min(block_rows, max(N, 1))         # == full array dim

    if weights_bytes + block_rows * per_row > int(0.9 * vmem_cap):
        # TODO(synk): K-tiled fallback (hidden reduction grid axis marked
        # "arbitrary" + f32 accumulator scratch) for weights that do not stay
        # VMEM-resident (relevant on v7x's 64 MiB/TC); not implemented.
        raise ValueError("Linear2 weights too large to stay VMEM-resident; "
                         "K-tiled variant not implemented.")

    # Zero-pad only the feature axis of x to the lane-padded kernel width.
    needs_feature_pad = in_p != in_size
    if needs_feature_pad:
        x = jnp.pad(x, ((0, 0), (0, in_p - in_size)))

    grid = (_cdiv(N, block_rows),)

    # Weights/biases have a constant index_map -> single pipeline buffer.
    def resident(a):
        return pl.BlockSpec(a.shape, lambda i: (0, 0), pipeline_mode=pl.Buffered(1))

    flops = 2 * N * (in_p * hid_p + hid_p * out_p)
    bytes_accessed = (N * in_size * x_itemsize + weights_bytes
                      + N * out_size * out_itemsize)

    vmem_est = weights_bytes + block_rows * per_row
    vmem_limit = min(max(int(1.5 * vmem_est), 32 * 1024 * 1024),
                     int(0.9 * vmem_cap))

    cp_kwargs = dict(dimension_semantics=("parallel",),
                     vmem_limit_bytes=vmem_limit)
    if needs_feature_pad:
        # Let XLA fuse the jnp.pad of x into the pallas_call operand instead
        # of materializing a padded copy of x in HBM.
        cp_kwargs["allow_input_fusion"] = [True, False, False, False, False]

    return pl.pallas_call(
        linear2_kernel,
        out_shape=jax.ShapeDtypeStruct((N, out_size), out_dtype),
        grid_spec=pltpu.PrefetchScalarGridSpec(
            num_scalar_prefetch=0,
            grid=grid,
            in_specs=[
                pl.BlockSpec((block_rows, in_p), lambda i: (i, 0)),  # x tile
                resident(w1), resident(b1),
                resident(w2), resident(b2),
            ],
            out_specs=pl.BlockSpec((block_rows, out_size), lambda i: (i, 0)),
        ),
        compiler_params=pltpu.CompilerParams(**cp_kwargs),
        cost_estimate=pl.CostEstimate(
            flops=flops, transcendentals=0, bytes_accessed=bytes_accessed
        ),
    )(x, w1, b1, w2, b2)


def init_linear2_params(key, in_size, out_size, *, matmul_dtype=jnp.bfloat16):
    """nn.Linear-style init U(-1/sqrt(fan_in), 1/sqrt(fan_in)); weights stored
    transposed (fan_in, fan_out), zero-padded to multiples of 128 lanes, and
    cast to `matmul_dtype` for the MXU.  Unpadded f32 copies kept for the
    pure-JAX reference check."""
    hidden = max(in_size, out_size)  # GraphNetConfig.hidden_size is None
    in_p = _round_up(in_size, 128)
    hid_p = _round_up(hidden, 128)
    out_p = _round_up(out_size, 128)
    ks = jax.random.split(key, 4)

    def lin(kw, kb, fan_in, fan_out, fi_p, fo_p):
        bound = 1.0 / math.sqrt(fan_in)
        w = jax.random.uniform(kw, (fan_in, fan_out), jnp.float32, -bound, bound)
        b = jax.random.uniform(kb, (1, fan_out), jnp.float32, -bound, bound)
        w_pad = jnp.zeros((fi_p, fo_p), jnp.float32).at[:fan_in, :fan_out].set(w)
        b_pad = jnp.zeros((1, fo_p), jnp.float32).at[:, :fan_out].set(b)
        return w, b, w_pad.astype(matmul_dtype), b_pad  # biases stay f32

    w1, b1, w1p, b1p = lin(ks[0], ks[1], in_size, hidden, in_p, hid_p)
    w2, b2, w2p, b2p = lin(ks[2], ks[3], hidden, out_size, hid_p, out_p)
    return {
        "w1": w1p, "b1": b1p, "w2": w2p, "b2": b2p,
        "in_size": in_size, "out_size": out_size, "hidden": hidden,
        # unpadded f32 copies for the pure-JAX reference
        "w1_ref": w1, "b1_ref": b1, "w2_ref": w2, "b2_ref": b2,
    }


def linear2_reference(x, p):
    h = x @ p["w1_ref"] + p["b1_ref"]
    h = jnp.where(h > 0, h, NEG_SLOPE * h)
    return h @ p["w2_ref"] + p["b2_ref"]


if __name__ == "__main__":
    key = jax.random.PRNGKey(0)
    k_x, k_p, k_x2 = jax.random.split(key, 3)

    N, in_size, out_size = 16, 32, 64   # hidden = max(32, 64) = 64
    params = init_linear2_params(k_p, in_size, out_size)

    x = jax.random.normal(k_x, (N, in_size), jnp.float32)
    y = jax.block_until_ready(linear2_forward(x, params))
    y_ref = linear2_reference(x, params)
    assert y.shape == (N, out_size), f"bad output shape {y.shape}"
    # bf16 MXU operands with f32 accumulation -> relaxed tolerance vs f32 ref.
    assert jnp.allclose(y, y_ref, atol=3e-2, rtol=3e-2), "mismatch vs reference"

    # Ragged batch (N not a multiple of the row tile) exercises the cdiv grid
    # path with masked writes on the last block.
    N2 = 37
    x2 = jax.random.normal(k_x2, (N2, in_size), jnp.float32)
    y2 = jax.block_until_ready(linear2_forward(x2, params))
    y2_ref = linear2_reference(x2, params)
    assert y2.shape == (N2, out_size), f"bad output shape {y2.shape}"
    assert jnp.allclose(y2, y2_ref, atol=3e-2, rtol=3e-2), "mismatch vs reference (ragged)"

    print("KERNEL_OK")
</pallas_src>

<mosaic_0001>
module attributes {stable_mosaic.version = 11 : i64} {
  func.func @linear2_kernel(%arg0: i32, %arg1: memref<8x128xf32, #tpu.memory_space<vmem>>, %arg2: memref<128x128xbf16, #tpu.memory_space<vmem>>, %arg3: memref<1x128xf32, #tpu.memory_space<vmem>>, %arg4: memref<128x128xbf16, #tpu.memory_space<vmem>>, %arg5: memref<1x128xf32, #tpu.memory_space<vmem>>, %arg6: memref<8x64xf32, #tpu.memory_space<vmem>>) attributes {dimension_semantics = [#tpu.dimension_semantics<parallel>], iteration_bounds = array<i64: 2>, scalar_prefetch = 0 : i64, scratch_operands = 0 : i64, tpu.core_type = #tpu.core_type<tc>, window_params = [{transform_indices = @transform_0, window_bounds = array<i64: 8, 128>}, {pipeline_mode = #tpu.pipeline_mode<synchronous>, transform_indices = @transform_1, window_bounds = array<i64: 128, 128>}, {pipeline_mode = #tpu.pipeline_mode<synchronous>, transform_indices = @transform_2, window_bounds = array<i64: 1, 128>}, {pipeline_mode = #tpu.pipeline_mode<synchronous>, transform_indices = @transform_3, window_bounds = array<i64: 128, 128>}, {pipeline_mode = #tpu.pipeline_mode<synchronous>, transform_indices = @transform_4, window_bounds = array<i64: 1, 128>}, {transform_indices = @transform_5, window_bounds = array<i64: 8, 64>}]} {
    %c0 = arith.constant 0 : index
    %c0_0 = arith.constant 0 : index
    %0 = vector.load %arg1[%c0, %c0_0] : memref<8x128xf32, #tpu.memory_space<vmem>>, vector<8x128xf32>
    %1 = arith.truncf %0 : vector<8x128xf32> to vector<8x128xbf16>
    %c0_1 = arith.constant 0 : index
    %c0_2 = arith.constant 0 : index
    %2 = vector.load %arg2[%c0_1, %c0_2] : memref<128x128xbf16, #tpu.memory_space<vmem>>, vector<128x128xbf16>
    %cst = arith.constant dense<0.000000e+00> : vector<8x128xf32>
    %3 = tpu.matmul %1, %2, %cst {dimension_numbers = #tpu.dot_dimension_numbers<[1], [0], [0], [1], [0, 0, 1, 1], [], []>} : vector<8x128xbf16>, vector<128x128xbf16>, vector<8x128xf32> -> vector<8x128xf32>
    %c0_3 = arith.constant 0 : index
    %c0_4 = arith.constant 0 : index
    %4 = vector.load %arg3[%c0_3, %c0_4] : memref<1x128xf32, #tpu.memory_space<vmem>>, vector<1x128xf32>
    %5 = vector.broadcast %4 : vector<1x128xf32> to vector<8x128xf32>
    %6 = arith.addf %3, %5 : vector<8x128xf32>
    %cst_5 = arith.constant 0.00999999977 : f32
    %7 = vector.broadcast %cst_5 : f32 to vector<8x128xf32>
    %8 = arith.mulf %7, %6 : vector<8x128xf32>
    %9 = arith.maximumf %6, %8 : vector<8x128xf32>
    %10 = arith.truncf %9 : vector<8x128xf32> to vector<8x128xbf16>
    %c0_6 = arith.constant 0 : index
    %c0_7 = arith.constant 0 : index
    %11 = vector.load %arg4[%c0_6, %c0_7] : memref<128x128xbf16, #tpu.memory_space<vmem>>, vector<128x128xbf16>
    %cst_8 = arith.constant dense<0.000000e+00> : vector<8x128xf32>
    %12 = tpu.matmul %10, %11, %cst_8 {dimension_numbers = #tpu.dot_dimension_numbers<[1], [0], [0], [1], [0, 0, 1, 1], [], []>} : vector<8x128xbf16>, vector<128x128xbf16>, vector<8x128xf32> -> vector<8x128xf32>
    %c0_9 = arith.constant 0 : index
    %c0_10 = arith.constant 0 : index
    %13 = vector.load %arg5[%c0_9, %c0_10] : memref<1x128xf32, #tpu.memory_space<vmem>>, vector<1x128xf32>
    %14 = vector.broadcast %13 : vector<1x128xf32> to vector<8x128xf32>
    %15 = arith.addf %12, %14 : vector<8x128xf32>
    %16 = vector.extract_strided_slice %15 {offsets = [0, 0], sizes = [8, 64], strides = [1, 1]} : vector<8x128xf32> to vector<8x64xf32>
    %c0_11 = arith.constant 0 : index
    %c0_12 = arith.constant 0 : index
    %17 = vector.load %arg6[%c0_11, %c0_12] : memref<8x64xf32, #tpu.memory_space<vmem>>, vector<8x64xf32>
    tpu.vector_store %arg6[%c0_11, %c0_12], %16 {strides = array<i32>} : memref<8x64xf32, #tpu.memory_space<vmem>>, vector<8x64xf32>,
    return
  }
  func.func @transform_0(%arg0: i32) -> (i32, i32) {
    %c0_i32 = arith.constant 0 : i32
    %c0_i32_0 = arith.constant 0 : i32
    return %arg0, %c0_i32 : i32, i32
  }
  func.func @transform_1(%arg0: i32) -> (i32, i32) {
    %c0_i32 = arith.constant 0 : i32
    %c0_i32_0 = arith.constant 0 : i32
    %c0_i32_1 = arith.constant 0 : i32
    return %c0_i32, %c0_i32_0 : i32, i32
  }
  func.func @transform_2(%arg0: i32) -> (i32, i32) {
    %c0_i32 = arith.constant 0 : i32
    %c0_i32_0 = arith.constant 0 : i32
    %c0_i32_1 = arith.constant 0 : i32
    return %c0_i32, %c0_i32_0 : i32, i32
  }
  func.func @transform_3(%arg0: i32) -> (i32, i32) {
    %c0_i32 = arith.constant 0 : i32
    %c0_i32_0 = arith.constant 0 : i32
    %c0_i32_1 = arith.constant 0 : i32
    return %c0_i32, %c0_i32_0 : i32, i32
  }
  func.func @transform_4(%arg0: i32) -> (i32, i32) {
    %c0_i32 = arith.constant 0 : i32
    %c0_i32_0 = arith.constant 0 : i32
    %c0_i32_1 = arith.constant 0 : i32
    return %c0_i32, %c0_i32_0 : i32, i32
  }
  func.func @transform_5(%arg0: i32) -> (i32, i32) {
    %c0_i32 = arith.constant 0 : i32
    %c0_i32_0 = arith.constant 0 : i32
    return %arg0, %c0_i32 : i32, i32
  }
}

</mosaic_0001>

<bundles_post_ra>
// kernel: tpu_custom_call.1
= control target key start
LH: loop header
LB: loop body
LE: loop exit
PB: predicated region body
PF: predicated region fallthrough
CT: control target
= control target key end

     0   :  { %10 = vsyncpa [#allocation3], 0  ;;  %s1159_s0 = inlined_call_operand.hbm [shape: f32[16,128], index: 0, kind: input, shape index: {}]   ;;  %s1160_s1 = inlined_call_operand.hbm [shape: bf16[128,128], index: 1, kind: input, shape index: {}]   ;;  %s1161_s2 = inlined_call_operand.vmem [shape: f32[1,128], index: 2, kind: input, shape index: {}]   ;;  %s1162_s3 = inlined_call_operand.hbm [shape: bf16[128,128], index: 3, kind: input, shape index: {}]   ;;  %s1163_s4 = inlined_call_operand.vmem [shape: f32[1,128], index: 4, kind: input, shape index: {}]   ;;  %s1164_s5 = inlined_call_operand.hbm [shape: f32[16,64], index: 5, kind: output, shape index: {}]  }
   0x1   :  { %12 = vsyncpa [#allocation3 + $0x1], 0 }
   0x2   :  { %13 = vsyncpa [#allocation6], 0 }
   0x3   :  { %14 = vsyncpa [#allocation4], 0 }
   0x4   :  { %16 = vsyncpa [#allocation4 + $0x1], 0  ;;  %s969_s18 = smov 0   ;;  %s971_s19 = smov 0  }
   0x5   :  { %s973_s20 = smov 0   ;;  %s975_s21 = smov 0  }
   0x6 LB: > { %s990_s22 = sadd.s32 4294967295, %s929_s21   ;;  %s602_s23 = sadd.s32 4294967294, %s929_s21   ;;  %s929_s21 = sphi %s975_s21, %s1186_s21   ;;  %s925_s20 = sphi %s973_s20, %s1185_s20   ;;  %s921_s19 = sphi %s971_s19, %s1184_s19   ;;  %s917_s18 = sphi %s969_s18, %s1183_s18  }
   0x7   : > { %p42_p0 = scmp.ne.s32.totalorder %s921_s19, %s917_s18  ;;  %p1165_p1 = scmp.eq.s32.totalorder %s990_s22, 0 }
   0x8   : > { %p156_p3 = scmp.eq.s32.totalorder %s602_s23, 1  ;;  %p603_p5 = scmp.ge.s32.totalorder %s929_s21, 1 }
   0x9   : > { %p999_p4 = por %p1165_p1, %p42_p0  ;;  %p163_p7 = scmp.lt.s32.totalorder %s929_s21, 3 }
   0xa   : > { %p1004_p6 = por %p156_p3, %p42_p0  ;;  %s931_s27 = smov [#allocation5]  }
   0xb   : > { %s1169_s24 = scalar_select %p999_p4, 1, 0 }
   0xc   : > { %s1170_s25 = scalar_select %p1004_p6, 1, 0 }
   0xd   : > { %p1009_p8 = pnand %p603_p5, %p163_p7  ;;  %s175_s28 = sshll.u32 %s931_s27, 4  ;;  %s176_s28 = int_to_ptr.vmem [resolvable:$true] %s175_s28 }
   0xe   : > { %s932_s30 = smov [#allocation7]   ;;  %s792_s7 = scalar_lea.vmem %s176_s28, 1024 }
   0xf   : > { %s1171_s26 = scalar_select %p1009_p8, 1, 0 }
  0x10   : > { %p706_p9 = pneg %p1009_p8  ;;  %s191_s6 = sshll.u32 %s932_s30, 4  ;;  %s192_s6 = int_to_ptr.vmem [resolvable:$true] %s191_s6 }
  0x11   : > { %p793_p13 = scmp.ne.s32.totalorder %s176_s28, %s792_s7  ;;  %p800_p5 = scmp.lt.s32.totalorder %s176_s28, %s176_s28 }
  0x12   : > { %p1018_p11 = pnand %p706_p9, %p1165_p1  ;;  %p801_p7 = scmp.lt.s32.totalorder %s792_s7, %s792_s7 }
  0x14   : > { %p783_p12 = pneg %p1018_p11  ;;  %p802_p10 = por %p801_p7, %p800_p5 }
  0x16   : > { %p795_p0 = pnand %p793_p13, %p783_p12 }
  0x18   : > { %p796_p3 = pneg %p795_p0 }
  0x1a   : > { %p803_p9 = pnand %p802_p10, %p796_p3 }
  0x1c   : > { %806 = shalt.err (!%p803_p9)
}
  0x1d   : > { %s933_s8 = smov 64   ;;  %s934_s9 = smov 4  }
  0x1e   : > { %709 = dma.hbm_to_vmem [thread:$0]  (!%p1018_p11), %s1160_s1, 1024, %s176_s28, [#allocation6], %s933_s8, %s933_s8, %s934_s9  }
  0x1f   : > { %s818_s12 = scalar_lea.vmem %s192_s6, 1024  ;;  %p826_p2 = scmp.lt.s32.totalorder %s192_s6, %s192_s6 }
  0x20   : > { %p819_p1 = scmp.ne.s32.totalorder %s192_s6, %s818_s12  ;;  %p827_p6 = scmp.lt.s32.totalorder %s818_s12, %s818_s12 }
  0x22   : > { %p821_p13 = pnand %p819_p1, %p783_p12  ;;  %p828_p5 = por %p827_p6, %p826_p2 }
  0x24   : > { %p822_p0 = pneg %p821_p13 }
  0x26   : > { %p829_p10 = pnand %p828_p5, %p822_p0 }
  0x28   : > { %832 = shalt.err (!%p829_p10)
}
  0x29   : > { %712 = dma.hbm_to_vmem [thread:$0]  (!%p1018_p11), %s1162_s3, 1024, %s192_s6, [#allocation6], %s933_s8, %s933_s8, %s934_s9  }
  0x2a   : > { %s1041_s15 = sadd.s32 1, %s929_s21   ;;  %s29_s16 = sadd.s32 1, %s925_s20 }
  0x2b   : > { %s26_s17 = ssub.s32 %s929_s21, %s1041_s15  ;;  %p36_p1 = scmp.ne.s32.totalorder %s925_s20, %s921_s19 }
  0x2c   : > { %p27_p2 = scmp.eq.s32.totalorder %s26_s17, 0  ;;  %p37_p6 = scmp.eq.s32.totalorder %s929_s21, 0 }
  0x2d   : > { %p1173_p12 = scmp.eq.s32.totalorder %s990_s22, 1  ;;  %p723_p7 = scmp.lt.s32.totalorder %s929_s21, 2 }
  0x2e   : > { %s1057_s27 = scalar_select %p27_p2, %s925_s20, %s29_s16  }
  0x2f   : > { %p1051_p3 = por %p1173_p12, %p36_p1  ;;  %p38_p9 = por %p37_p6, %p36_p1 }
  0x30   : > { %s208_s28 = sand.u32 1, %s925_s20   ;;  %s608_s30 = sshll.u32 %s929_s21, 7 }
  0x31   : > { %s1174_s23 = scalar_select %p1051_p3, 1, 0 }
  0x32   : > { %s607_s29 = sshll.u32 %s208_s28, 3  ;;  %s1064_s8 = scalar_lea.hbm %s1159_s0, %s608_s30 }
  0x33   : > { %s212_s9 = scalar_lea.vmem [#allocation2], %s607_s29  ;;  %p1066_p11 = pnand %p723_p7, %p38_p9 }
  0x34   : > { %s219_s10 = sshll.u32 %s212_s9, 4  ;;  %s209_s12 = scalar_lea.sflag [#allocation3], %s208_s28  ;;  %s220_s10 = int_to_ptr.vmem [resolvable:$true] %s219_s10 }
  0x35   : > { %s833_s13 = scalar_lea.hbm %s1064_s8, 128  ;;  %p835_p0 = pneg %p1066_p11 }
  0x36   : > { %p834_p13 = scmp.ne.s32.totalorder %s1064_s8, %s833_s13  ;;  %s838_s17 = scalar_lea.hbm %s1159_s0, 256 }
  0x37   : > { %p839_p1 = scmp.lt.s32.totalorder %s1064_s8, %s1159_s0  ;;  %p840_p2 = scmp.lt.s32.totalorder %s838_s17, %s833_s13 }
  0x38   : > { %p836_p5 = pnand %p835_p0, %p834_p13 }
  0x39   : > { %p841_p6 = por %p840_p2, %p839_p1 }
  0x3a   : > { %p837_p10 = pneg %p836_p5 }
  0x3c   : > { %p842_p12 = pnand %p841_p6, %p837_p10 }
  0x3e   : > { %845 = shalt.err (!%p842_p12)
}
  0x3f   : > { %s846_s6 = scalar_lea.vmem %s220_s10, 128  ;;  %s935_s28 = smov [#allocation2]  }
  0x40   : > { %p847_p7 = scmp.ne.s32.totalorder %s220_s10, %s846_s6  ;;  %s851_s7 = sshll.u32 %s935_s28, 4  ;;  %s852_s7 = int_to_ptr.vmem [resolvable:$false] %s851_s7 }
  0x41   : > { %s853_s9 = scalar_lea.vmem %s852_s7, 256  ;;  %p854_p13 = scmp.lt.s32.totalorder %s220_s10, %s852_s7 }
  0x42   : > { %p849_p9 = pnand %p847_p7, %p835_p0  ;;  %p855_p5 = scmp.lt.s32.totalorder %s853_s9, %s846_s6 }
  0x44   : > { %p850_p3 = pneg %p849_p9  ;;  %p856_p4 = por %p855_p5, %p854_p13 }
  0x46   : > { %p857_p8 = pnand %p856_p4, %p850_p3 }
  0x48   : > { %860 = shalt.err (!%p857_p8)
}
  0x49   : > { %716 = dma.hbm_to_vmem [thread:$0]  (!%p1066_p11), %s1064_s8, 128, %s220_s10, %s209_s12  }
  0x4a   : > { %p1176_p10 = scmp.ne.s32.totalorder %s1171_s26, 0 }
  0x4b   : > { %s1087_s13 = sand.u32 (!%p1176_p10), 1, %s921_s19   ;;  %p1177_p4 = scmp.ne.s32.totalorder (!%p1176_p10), %s1169_s24, 0 }
  0x4c   : > { %228 = sbr.rel (%p1176_p10) target bundleno = 529 (0x211), region = 40  ;;  %s610_s14 = sshll.u32 (!%p1176_p10), %s1087_s13, 3 }
  0x4d   : > { %s231_s16 = scalar_lea.sflag (!%p1176_p10), [#allocation3], %s1087_s13  ;;  %s1093_s17 = scalar_lea.vmem (!%p1176_p10), [#allocation2], %s610_s14 }
  0x51   : > { %904 = dma.done.wait (%p1177_p4), %s231_s16, 128  }
  0x52   : > { %906 = vsyncadd (%p1177_p4), %s231_s16, 4294967168  ;;  %p1178_p8 = scmp.eq.s32.totalorder %s990_s22, 0 }
  0x54   : > { %908 = dma.done.wait (%p1178_p8), [#allocation6], 2048   ;;  %p1179_p3 = pmov %p1178_p8 }
  0x55   : > { %v936_v0 = vmov 0.0   ;;  %vm937_vm0 = vmmov 0   ;;  %v765_v1 = vld [vmem:[#allocation5 + $0x38] sm:$0xff]   ;;  %v766_v2 = vld [vmem:[#allocation5 + $0x30] sm:$0xff]   ;;  %v767_v3 = vld [vmem:[#allocation5 + $0x28] sm:$0xff]   ;;  %s633_s11 = sshll.u32 %s990_s22, 7 }
  0x56   : > { %910 = vsyncadd (%p1179_p3), [#allocation6], 4294965248  ;;  %654 = vmatprep.subr.bf16.mxu0 %v936_v0  ;;  %670 = vmatprep.mubr.msk.bf16.mxu0 %vm937_vm0, %v936_v0  ;;  %v773_v4 = vld [vmem:[#allocation7 + $0x38] sm:$0xff]   ;;  %v768_v5 = vld [vmem:[#allocation5 + $0x20] sm:$0xff]   ;;  %s268_s12 = scalar_lea.vmem [#allocation8], %s610_s14  ;;  %vm497_vm1 = vcmask 523264   ;;  %s1116_s28 = scalar_lea.hbm %s1164_s5, %s633_s11 }
  0x57   : > { %674 = vmatprep.subr.bf16.mxu1 %v936_v0  ;;  %690 = vmatprep.mubr.msk.bf16.mxu1 %vm937_vm0, %v936_v0  ;;  %v774_v6 = vld [vmem:[#allocation7 + $0x30] sm:$0xff]   ;;  %v769_v7 = vld [vmem:[#allocation5 + $0x18] sm:$0xff]   ;;  %v775_v8 = vld [vmem:[#allocation7 + $0x28] sm:$0xff]   ;;  %s513_s30 = sshll.u32 %s268_s12, 4  ;;  %s500_s22 = scalar_lea.sflag [#allocation4], %s1087_s13  ;;  %s1118_s30 = int_to_ptr.vmem [resolvable:$true] %s513_s30 }
  0x58   : > { %655 = vmatpush3.bf16.msra.mxu0 %v765_v1  ;;  %675 = vmatpush3.bf16.msra.mxu1 %v773_v4  ;;  %v770_v9 = vld [vmem:[#allocation5 + $0x10] sm:$0xff]   ;;  %v776_v10 = vld [vmem:[#allocation7 + $0x20] sm:$0xff]   ;;  %v771_v11 = vld [vmem:[#allocation5 + $0x8] sm:$0xff]   ;;  %s861_s7 = scalar_lea.vmem %s1118_s30, 128  ;;  %p1180_p0 = scmp.ne.s32.totalorder %s1174_s23, 0 }
  0x59   : > { %656 = vmatprep.subr.bf16.mxu0 %v936_v0  ;;  %676 = vmatprep.subr.bf16.mxu1 %v936_v0  ;;  %v777_v12 = vld [vmem:[#allocation7 + $0x18] sm:$0xff]   ;;  %v772_v13 = vld [vmem:[#allocation5] sm:$0xff]   ;;  %v778_v15 = vld [vmem:[#allocation7 + $0x10] sm:$0xff]   ;;  %p862_p11 = scmp.ne.s32.totalorder %s1118_s30, %s861_s7  ;;  %s938_s9 = smov [#allocation8]  }
  0x5a   : > { %v270_v14 = vld [vmem:[%s1093_s17] sm:$0xff]  ;;  %v779_v17 = vld [vmem:[#allocation7 + $0x8] sm:$0xff]   ;;  %v780_v18 = vld [vmem:[#allocation7] sm:$0xff]   ;;  %s865_s14 = sshll.u32 %s938_s9, 4  ;;  %s866_s14 = int_to_ptr.vmem [resolvable:$false] %s865_s14 }
  0x5b   : > { %v271_v16 = vpack.c.bf16 %v270_v14, %v270_v14  ;;  %v614_v19 = vld [vmem:[%s1161_s2] ss:$0 sm:$0xff]  ;;  %p863_p1 = pnand %p862_p11, %p1180_p0  ;;  %s867_s16 = scalar_lea.vmem %s866_s14, 256 }
  0x5c   : > { %657 = vmatpush3.bf16.msra.mxu0 %v766_v2  ;;  %677 = vmatpush3.bf16.msra.mxu1 %v774_v6  ;;  %v623_v28 = vld [vmem:[%s1163_s4] ss:$0 sm:$0xff]  ;;  %p868_p6 = scmp.lt.s32.totalorder %s1118_s30, %s866_s14  ;;  %p869_p12 = scmp.lt.s32.totalorder %s867_s16, %s861_s7 }
  0x5d   : > { %658 = vmatprep.subr.bf16.mxu0 %v936_v0  ;;  %678 = vmatprep.subr.bf16.mxu1 %v936_v0  ;;  %p864_p2 = pneg %p863_p1 }
  0x5e   : > { %p870_p7 = por %p869_p12, %p868_p6 }
  0x60   : > { %659 = vmatpush3.bf16.msra.mxu0 %v767_v3  ;;  %679 = vmatpush3.bf16.msra.mxu1 %v775_v8  ;;  %p871_p9 = pnand %p870_p7, %p864_p2 }
  0x61   : > { %660 = vmatprep.subr.bf16.mxu0 %v936_v0  ;;  %680 = vmatprep.subr.bf16.mxu1 %v936_v0 }
  0x64   : > { %661 = vmatpush3.bf16.msra.mxu0 %v768_v5  ;;  %681 = vmatpush3.bf16.msra.mxu1 %v776_v10 }
  0x65   : > { %662 = vmatprep.subr.bf16.mxu0 %v936_v0  ;;  %682 = vmatprep.subr.bf16.mxu1 %v936_v0 }
  0x68   : > { %663 = vmatpush3.bf16.msra.mxu0 %v769_v7  ;;  %683 = vmatpush3.bf16.msra.mxu1 %v777_v12 }
  0x69   : > { %664 = vmatprep.subr.bf16.mxu0 %v936_v0  ;;  %684 = vmatprep.subr.bf16.mxu1 %v936_v0 }
  0x6c   : > { %665 = vmatpush3.bf16.msra.mxu0 %v770_v9  ;;  %685 = vmatpush3.bf16.msra.mxu1 %v778_v15 }
  0x6d   : > { %666 = vmatprep.subr.bf16.mxu0 %v936_v0  ;;  %686 = vmatprep.subr.bf16.mxu1 %v936_v0 }
  0x70   : > { %667 = vmatpush3.bf16.msra.mxu0 %v771_v11  ;;  %687 = vmatpush3.bf16.msra.mxu1 %v779_v17 }
  0x71   : > { %668 = vmatprep.subr.bf16.mxu0 %v936_v0  ;;  %688 = vmatprep.subr.bf16.mxu1 %v936_v0 }
  0x74   : > { %669 = vmatpush3.bf16.msra.mxu0 %v772_v13  ;;  %689 = vmatpush3.bf16.msra.mxu1 %v780_v18 }
  0x77   : > { %671 = vmatmul.mubr.bf16.vlgmr.msra.gmra.mxu0 %v271_v16 }
 0x137   : > { %v377_v20 = vpop.f32.mrf.mxu0 }
 0x138   : > { %v378_v21 = vadd.f32 %v614_v19, %v377_v20 }
 0x139   : > { %v672_v22 = vpop.f32.mrf.mxu0 }
 0x13a   : > { %v383_v23 = vmul.f32 0.01, %v378_v21 }
 0x13b   : > { %v380_v24 = vpop.f32.mrf.mxu0 }
 0x13c   : > { %v384_v25 = vmax.f32 %v378_v21, %v383_v23 }
 0x13d   : > { %v673_v26 = vpop.f32.mrf.mxu0 }
 0x13e   : > { %v385_v27 = vpack.c.bf16 %v384_v25, %v384_v25 }
 0x140   : > { %691 = vmatmul.mubr.bf16.vlgmr.msra.gmra.mxu1 %v385_v27 }
 0x200   : > { %v491_v29 = vpop.f32.mrf.mxu1 }
 0x201   : > { %v492_v30 = vadd.f32 %v623_v28, %v491_v29 }
 0x202   : > { %v692_v31 = vpop.f32.mrf.mxu1 }
 0x203   : > { %498 = vst.msk [vmem:[%s268_s12] sm:$0xff] %vm497_vm1, %v492_v30 }
 0x204   : > { %v494_v32 = vpop.f32.mrf.mxu1 }
 0x205   : > { %874 = shalt.err (!%p871_p9)
}
 0x206   : > { %s875_s17 = scalar_lea.hbm %s1116_s28, 128  ;;  %s879_s26 = scalar_lea.hbm %s1164_s5, 256 }
 0x207   : > { %p876_p13 = scmp.ne.s32.totalorder %s1116_s28, %s875_s17  ;;  %p880_p4 = scmp.lt.s32.totalorder %s1116_s28, %s1164_s5 }
 0x208   : > { %p881_p8 = scmp.lt.s32.totalorder %s879_s26, %s875_s17 }
 0x209   : > { %p877_p5 = pnand %p876_p13, %p1180_p0 }
 0x20a   : > { %p882_p3 = por %p881_p8, %p880_p4 }
 0x20b   : > { %p878_p10 = pneg %p877_p5 }
 0x20d   : > { %p883_p11 = pnand %p882_p3, %p878_p10 }
 0x20f   : > { %886 = shalt.err (!%p883_p11)
}
 0x210   : > { %704 = dma.vmem_to_hbm [thread:$0]  (%p1180_p0), %s1118_s30, 128, %s1116_s28, %s500_s22   ;;  %v693_v33 = vpop.f32.mrf.mxu1 }
 0x211 PF: > { %s525_s11 = sand.u32 1, %s917_s18   ;;  %p1181_p1 = scmp.ne.s32.totalorder %s1170_s25, 0 }
 0x212   : > { %p1182_p2 = scmp.ge.s32.totalorder %s929_s21, 2  ;;  %s526_s12 = scalar_lea.sflag [#allocation4], %s525_s11 }
 0x214   : > { %p718_p6 = pnand %p1182_p2, %p1181_p1 }
 0x216   : > { %p719_p12 = pneg %p718_p6 }
 0x218   : > { %912 = dma.done.wait (%p719_p12), %s526_s12, 128  }
 0x219   : > { %914 = vsyncadd (%p719_p12), %s526_s12, 4294967168  ;;  %p19_p7 = scmp.ge.s32.totalorder %s1041_s15, 4   ;;  %s1183_s18 = smov %s921_s19 }
 0x21a   : > { %s1184_s19 = smov %s925_s20  ;;  %s1185_s20 = smov %s1057_s27 }
 0x21b   : > { %s1186_s21 = smov %s1041_s15  ;;  %21 = sbr.rel (!%p19_p7) target bundleno = 6 (0x6), region = 93 }
 0x220   :  { %531 = vsyncpa [#allocation3], 1 }
 0x221   :  { %533 = vsyncpa [#allocation3 + $0x1], 1 }
 0x222   :  { %534 = vsyncpa [#allocation6], 1 }
 0x223   :  { %535 = vsyncpa [#allocation4], 1 }
 0x224   :  { %537 = vsyncpa [#allocation4 + $0x1], 1 }

</bundles_post_ra>
